<compile_context>
chip_gen: v6e
topology: v6e:2x2x1
jax: 0.10.0
libtpu: 0.0.40
codegen_flags: <defaults>
</compile_context>

<pallas_src>
import jax
import jax.numpy as jnp
from jax.experimental import pallas as pl
from jax.experimental.pallas import tpu as pltpu


def _round_up(x, m):
    return ((x + m - 1) // m) * m


def _one_input_basis_kernel(v_ref, w1_ref, b1_ref, w2_ref, o_ref):
    # Two MXU matmuls + bias add + tanh (EUP), fused in one VMEM-resident
    # invocation.  w1/b1/w2 blocks have constant index_maps, so they are
    # fetched once and stay resident while batch tiles stream through.
    h = jnp.dot(v_ref[...], w1_ref[...], preferred_element_type=jnp.float32)
    h = jnp.tanh(h + b1_ref[...])                       # (TB, Hpad) + (1, Hpad)
    out = jnp.dot(h, w2_ref[...], preferred_element_type=jnp.float32)
    o_ref[...] = out.astype(o_ref.dtype)


def one_input_basis_forward(v, w1, b1, w2, *, block_batch=4096):
    """Fused forward pass of OneInputBasis.

    Args:
      v:  (batch, num_sensors)   float32
      w1: (num_sensors, hidden)  float32   (PyTorch l1.weight.T)
      b1: (1, hidden)            float32   (PyTorch l1.bias[None, :])
      w2: (hidden, dim1)         float32   (PyTorch l4.weight.T)

    Returns:
      (batch, dim1) float32
    """
    batch, num_sensors = v.shape
    hidden = w1.shape[1]
    dim1 = w2.shape[1]

    # --- Pad the hidden (contraction) dimension to a lane multiple (128). ---
    # Exact: tanh(0 + 0) = 0 and the matching zero rows of w2 add nothing.
    h_pad = _round_up(hidden, 128)
    if h_pad != hidden:
        w1 = jnp.pad(w1, ((0, 0), (0, h_pad - hidden)))
        b1 = jnp.pad(b1, ((0, 0), (0, h_pad - hidden)))
        w2 = jnp.pad(w2, ((0, h_pad - hidden), (0, 0)))

    # --- Batch: pad only to the sublane multiple (8); ragged last block. ----
    b_pad = _round_up(batch, 8)
    if b_pad != batch:
        v = jnp.pad(v, ((0, b_pad - batch), (0, 0)))

    # --- Batch tile selection. ----------------------------------------------
    #   * never larger than block_batch (VMEM: ~5 MiB at 4096, safe on v5e's
    #     16 MiB default scoped limit) nor the padded batch itself,
    #   * capped at ~batch/4 (>=512) so large batches give >= 4 grid steps
    #     (v7x: 2 TCs x >=2 pipelined steps each),
    #   * always a multiple of 8 so the BlockSpec satisfies (8, 128) tiling.
    tb = min(block_batch, b_pad)
    quarter = _round_up(pl.cdiv(b_pad, 4), 8)
    tb = min(tb, max(512, quarter))
    grid = (pl.cdiv(b_pad, tb),)

    cost = pl.CostEstimate(
        flops=2 * b_pad * (num_sensors * h_pad + h_pad * dim1),
        transcendentals=b_pad * h_pad,
        bytes_accessed=4 * (b_pad * num_sensors + num_sensors * h_pad
                            + h_pad + h_pad * dim1 + b_pad * dim1),
    )

    out = pl.pallas_call(
        _one_input_basis_kernel,
        out_shape=jax.ShapeDtypeStruct((b_pad, dim1), v.dtype),
        grid=grid,
        in_specs=[
            pl.BlockSpec((tb, num_sensors), lambda i: (i, 0)),     # stream batch
            pl.BlockSpec((num_sensors, h_pad), lambda i: (0, 0)),  # resident
            pl.BlockSpec((1, h_pad), lambda i: (0, 0)),            # resident
            pl.BlockSpec((h_pad, dim1), lambda i: (0, 0)),         # resident
        ],
        out_specs=pl.BlockSpec((tb, dim1), lambda i: (i, 0)),
        compiler_params=pltpu.CompilerParams(
            dimension_semantics=("parallel",)),
        cost_estimate=cost,
    )(v, w1, b1, w2)

    return out[:batch] if b_pad != batch else out


def init_params(key, num_sensors, hidden, dim1, dtype=jnp.float32):
    """Deterministic synthetic init (PyTorch-like uniform fan-in scaling)."""
    k1, k2, k3 = jax.random.split(key, 3)
    bound1 = 1.0 / jnp.sqrt(num_sensors)
    bound2 = 1.0 / jnp.sqrt(hidden)
    # Stored already transposed: (in, out)
    w1 = jax.random.uniform(k1, (num_sensors, hidden), dtype, -bound1, bound1)
    b1 = jax.random.uniform(k2, (1, hidden), dtype, -bound1, bound1)
    w2 = jax.random.uniform(k3, (hidden, dim1), dtype, -bound2, bound2)
    return w1, b1, w2


def reference_forward(v, w1, b1, w2):
    return jnp.tanh(v @ w1 + b1) @ w2


if __name__ == "__main__":
    # Small shapes consistent with the module: OneInputBasis(num_sensors=64, dim1=32)
    batch = 8
    num_sensors = 64
    hidden = 100          # hard-coded 100 in the PyTorch module
    dim1 = 32

    key = jax.random.PRNGKey(0)
    k_v, k_p = jax.random.split(key)

    v = jax.random.normal(k_v, (batch, num_sensors), jnp.float32)
    w1, b1, w2 = init_params(k_p, num_sensors, hidden, dim1)

    out = jax.block_until_ready(one_input_basis_forward(v, w1, b1, w2))
    ref = reference_forward(v, w1, b1, w2)
    assert out.shape == (batch, dim1), out.shape
    assert jnp.allclose(out, ref, atol=1e-5, rtol=1e-5), "mismatch vs reference"

    # Gridded path with a ragged, non-tile-aligned batch (1030 -> tb=512, 3 steps).
    big_batch = 1030
    v_big = jax.random.normal(k_v, (big_batch, num_sensors), jnp.float32)
    out_big = jax.block_until_ready(one_input_basis_forward(v_big, w1, b1, w2))
    ref_big = reference_forward(v_big, w1, b1, w2)
    assert out_big.shape == (big_batch, dim1), out_big.shape
    assert jnp.allclose(out_big, ref_big, atol=1e-5, rtol=1e-5), "mismatch (gridded)"

    # Larger batch exercising the >=4-grid-step cap (5000 -> tb=1256, 4 steps).
    huge_batch = 5000
    v_huge = jax.random.normal(k_v, (huge_batch, num_sensors), jnp.float32)
    out_huge = jax.block_until_ready(one_input_basis_forward(v_huge, w1, b1, w2))
    ref_huge = reference_forward(v_huge, w1, b1, w2)
    assert out_huge.shape == (huge_batch, dim1), out_huge.shape
    assert jnp.allclose(out_huge, ref_huge, atol=1e-5, rtol=1e-5), "mismatch (4-step)"

    print("KERNEL_OK")
</pallas_src>

<mosaic_0001>
module attributes {stable_mosaic.version = 11 : i64} {
  func.func @_one_input_basis_kernel(%arg0: i32, %arg1: memref<8x64xf32, #tpu.memory_space<vmem>>, %arg2: memref<64x128xf32, #tpu.memory_space<vmem>>, %arg3: memref<1x128xf32, #tpu.memory_space<vmem>>, %arg4: memref<128x32xf32, #tpu.memory_space<vmem>>, %arg5: memref<8x32xf32, #tpu.memory_space<vmem>>) attributes {dimension_semantics = [#tpu.dimension_semantics<parallel>], iteration_bounds = array<i64: 1>, scalar_prefetch = 0 : i64, scratch_operands = 0 : i64, tpu.core_type = #tpu.core_type<tc>, window_params = [{transform_indices = @transform_0, window_bounds = array<i64: 8, 64>}, {pipeline_mode = #tpu.pipeline_mode<synchronous>, transform_indices = @transform_1, window_bounds = array<i64: 64, 128>}, {pipeline_mode = #tpu.pipeline_mode<synchronous>, transform_indices = @transform_2, window_bounds = array<i64: 1, 128>}, {pipeline_mode = #tpu.pipeline_mode<synchronous>, transform_indices = @transform_3, window_bounds = array<i64: 128, 32>}, {transform_indices = @transform_4, window_bounds = array<i64: 8, 32>}]} {
    %c0 = arith.constant 0 : index
    %c0_0 = arith.constant 0 : index
    %0 = vector.load %arg1[%c0, %c0_0] : memref<8x64xf32, #tpu.memory_space<vmem>>, vector<8x64xf32>
    %c0_1 = arith.constant 0 : index
    %c0_2 = arith.constant 0 : index
    %1 = vector.load %arg2[%c0_1, %c0_2] : memref<64x128xf32, #tpu.memory_space<vmem>>, vector<64x128xf32>
    %cst = arith.constant dense<0.000000e+00> : vector<8x128xf32>
    %2 = tpu.matmul %0, %1, %cst {dimension_numbers = #tpu.dot_dimension_numbers<[1], [0], [0], [1], [0, 0, 1, 1], [], []>} : vector<8x64xf32>, vector<64x128xf32>, vector<8x128xf32> -> vector<8x128xf32>
    %c0_3 = arith.constant 0 : index
    %c0_4 = arith.constant 0 : index
    %3 = vector.load %arg3[%c0_3, %c0_4] : memref<1x128xf32, #tpu.memory_space<vmem>>, vector<1x128xf32>
    %4 = vector.broadcast %3 : vector<1x128xf32> to vector<8x128xf32>
    %5 = arith.addf %2, %4 : vector<8x128xf32>
    %6 = math.tanh %5 : vector<8x128xf32>
    %c0_5 = arith.constant 0 : index
    %c0_6 = arith.constant 0 : index
    %7 = vector.load %arg4[%c0_5, %c0_6] : memref<128x32xf32, #tpu.memory_space<vmem>>, vector<128x32xf32>
    %cst_7 = arith.constant dense<0.000000e+00> : vector<8x32xf32>
    %8 = tpu.matmul %6, %7, %cst_7 {dimension_numbers = #tpu.dot_dimension_numbers<[1], [0], [0], [1], [0, 0, 1, 1], [], []>} : vector<8x128xf32>, vector<128x32xf32>, vector<8x32xf32> -> vector<8x32xf32>
    %c0_8 = arith.constant 0 : index
    %c0_9 = arith.constant 0 : index
    %9 = vector.load %arg5[%c0_8, %c0_9] : memref<8x32xf32, #tpu.memory_space<vmem>>, vector<8x32xf32>
    tpu.vector_store %arg5[%c0_8, %c0_9], %8 {strides = array<i32>} : memref<8x32xf32, #tpu.memory_space<vmem>>, vector<8x32xf32>,
    return
  }
  func.func @transform_0(%arg0: i32) -> (i32, i32) {
    %c0_i32 = arith.constant 0 : i32
    %c0_i32_0 = arith.constant 0 : i32
    return %arg0, %c0_i32 : i32, i32
  }
  func.func @transform_1(%arg0: i32) -> (i32, i32) {
    %c0_i32 = arith.constant 0 : i32
    %c0_i32_0 = arith.constant 0 : i32
    %c0_i32_1 = arith.constant 0 : i32
    return %c0_i32, %c0_i32_0 : i32, i32
  }
  func.func @transform_2(%arg0: i32) -> (i32, i32) {
    %c0_i32 = arith.constant 0 : i32
    %c0_i32_0 = arith.constant 0 : i32
    %c0_i32_1 = arith.constant 0 : i32
    return %c0_i32, %c0_i32_0 : i32, i32
  }
  func.func @transform_3(%arg0: i32) -> (i32, i32) {
    %c0_i32 = arith.constant 0 : i32
    %c0_i32_0 = arith.constant 0 : i32
    %c0_i32_1 = arith.constant 0 : i32
    return %c0_i32, %c0_i32_0 : i32, i32
  }
  func.func @transform_4(%arg0: i32) -> (i32, i32) {
    %c0_i32 = arith.constant 0 : i32
    %c0_i32_0 = arith.constant 0 : i32
    return %arg0, %c0_i32 : i32, i32
  }
}

</mosaic_0001>

<bundles_post_ra>
// kernel: tpu_custom_call.1
= control target key start
LH: loop header
LB: loop body
LE: loop exit
PB: predicated region body
PF: predicated region fallthrough
CT: control target
= control target key end

     0   :  { %v320_v1 = vmov 0.0   ;;  %vm321_vm0 = vmmov 0   ;;  %s455_s0 = inlined_call_operand.vmem [shape: f32[8,64], index: 0, kind: input, shape index: {}]   ;;  %s456_s1 = inlined_call_operand.vmem [shape: f32[64,128], index: 1, kind: input, shape index: {}]   ;;  %s457_s2 = inlined_call_operand.vmem [shape: f32[1,128], index: 2, kind: input, shape index: {}]   ;;  %s458_s3 = inlined_call_operand.vmem [shape: f32[128,32], index: 3, kind: input, shape index: {}]   ;;  %s459_s4 = inlined_call_operand.hbm [shape: f32[8,32], index: 4, kind: output, shape index: {}]  }
   0x1   :  { %v26_v0 = vld [vmem:[%s456_s1 + $0x38] sm:$0xff]  ;;  %239 = vmatprep.subr.mxu0 %v320_v1  ;;  %v25_v2 = vld [vmem:[%s456_s1 + $0x30] sm:$0xff]  ;;  %255 = vmatprep.mubr.msk.f32.mxu0 %vm321_vm0, %v320_v1  ;;  %v24_v3 = vld [vmem:[%s456_s1 + $0x28] sm:$0xff] }
   0x2   :  { %240 = vmatpush3.msra.mxu0 %v26_v0  ;;  %258 = vmatprep.subr.mxu1 %v320_v1  ;;  %v124_v4 = vld [vmem:[%s458_s3 + $0x78] sm:$0xff]  ;;  %v123_v5 = vld [vmem:[%s458_s3 + $0x70] sm:$0xff]  ;;  %v23_v6 = vld [vmem:[%s456_s1 + $0x20] sm:$0xff] }
   0x3   :  { %241 = vmatprep.subr.mxu0 %v320_v1  ;;  %290 = vmatprep.mubr.msk.f32.mxu1 %vm321_vm0, %v320_v1  ;;  %v122_v7 = vld [vmem:[%s458_s3 + $0x68] sm:$0xff] }
   0x4   :  { %242 = vmatpush3.msra.mxu0 %v25_v2  ;;  %259 = vmatpush3.msra.mxu1 %v124_v4 }
   0x5   :  { %243 = vmatprep.subr.mxu0 %v320_v1  ;;  %260 = vmatprep.subr.mxu1 %v320_v1 }
   0x6   :  { %9 = vsyncpa [#allocation3], 0  ;;  %244 = vmatpush3.msra.mxu0 %v24_v3  ;;  %261 = vmatpush3.msra.mxu1 %v123_v5  ;;  %v22_v8 = vld [vmem:[%s456_s1 + $0x18] sm:$0xff]  ;;  %v121_v9 = vld [vmem:[%s458_s3 + $0x60] sm:$0xff]  ;;  %vm34_vm1 = vcmask 523264   ;;  %s322_s13 = smov [#allocation2]  }
   0x7   :  { %245 = vmatprep.subr.mxu0 %v320_v1  ;;  %262 = vmatprep.subr.mxu1 %v320_v1  ;;  %v21_v10 = vld [vmem:[%s456_s1 + $0x10] sm:$0xff]  ;;  %v120_v11 = vld [vmem:[%s458_s3 + $0x58] sm:$0xff]  ;;  %v20_v12 = vld [vmem:[%s456_s1 + $0x8] sm:$0xff]  ;;  %s203_s14 = sshll.u32 %s322_s13, 4  ;;  %vm195_vm2 = vcmask 261120   ;;  %s204_s14 = int_to_ptr.vmem [resolvable:$true] %s203_s14 }
   0x8   :  { %246 = vmatpush3.msra.mxu0 %v23_v6  ;;  %263 = vmatpush3.msra.mxu1 %v122_v7  ;;  %v119_v13 = vld [vmem:[%s458_s3 + $0x50] sm:$0xff]  ;;  %v19_v14 = vld [vmem:[%s456_s1] sm:$0xff]  ;;  %v118_v15 = vld [vmem:[%s458_s3 + $0x48] sm:$0xff]  ;;  %p303_p1 = scmp.lt.s32.totalorder %s204_s14, %s204_s14 }
   0x9   :  { %247 = vmatprep.subr.mxu0 %v320_v1  ;;  %264 = vmatprep.subr.mxu1 %v320_v1  ;;  %v18_v16 = vld [vmem:[%s455_s0] sm:$0xff]  ;;  %v116_v18 = vld [vmem:[%s458_s3 + $0x38] sm:$0xff]  ;;  %v115_v19 = vld [vmem:[%s458_s3 + $0x30] sm:$0xff] }
   0xa   :  { %248 = vmatpush3.msra.mxu0 %v22_v8  ;;  %265 = vmatpush3.msra.mxu1 %v121_v9  ;;  %v117_v17 = vld [vmem:[%s458_s3 + $0x40] sm:$0xff]  ;;  %v114_v20 = vld [vmem:[%s458_s3 + $0x28] sm:$0xff]  ;;  %v112_v22 = vld [vmem:[%s458_s3 + $0x18] sm:$0xff] }
   0xb   :  { %249 = vmatprep.subr.mxu0 %v320_v1  ;;  %266 = vmatprep.subr.mxu1 %v320_v1  ;;  %v113_v21 = vld [vmem:[%s458_s3 + $0x20] sm:$0xff]  ;;  %v111_v23 = vld [vmem:[%s458_s3 + $0x10] sm:$0xff]  ;;  %v110_v24 = vld [vmem:[%s458_s3 + $0x8] sm:$0xff] }
   0xc   :  { %250 = vmatpush3.msra.mxu0 %v21_v10  ;;  %267 = vmatpush3.msra.mxu1 %v120_v11  ;;  %v109_v25 = vld [vmem:[%s458_s3] sm:$0xff]  ;;  %s298_s3 = scalar_lea.vmem %s204_s14, 128 }
   0xd   :  { %251 = vmatprep.subr.mxu0 %v320_v1  ;;  %268 = vmatprep.subr.mxu1 %v320_v1  ;;  %v211_v26 = vld [vmem:[%s457_s2] ss:$0 sm:$0xff]  ;;  %p299_p0 = scmp.ne.s32.totalorder %s204_s14, %s298_s3  ;;  %p304_p2 = scmp.lt.s32.totalorder %s298_s3, %s298_s3 }
   0xe   :  { %252 = vmatpush3.msra.mxu0 %v20_v12  ;;  %269 = vmatpush3.msra.mxu1 %v119_v13 }
   0xf   :  { %253 = vmatprep.subr.mxu0 %v320_v1  ;;  %270 = vmatprep.subr.mxu1 %v320_v1  ;;  %p305_p3 = por %p304_p2, %p303_p1 }
  0x10   :  { %254 = vmatpush3.msra.mxu0 %v19_v14  ;;  %271 = vmatpush3.msra.mxu1 %v118_v15 }
  0x11   :  { %256 = vmatmul.mubr.msk.f32.vlgmr.msra.gmra.mxu0 %vm34_vm1, %v18_v16  ;;  %272 = vmatprep.subr.mxu1 %v320_v1  ;;  %p306_p4 = pnand %p305_p3, %p299_p0 }
  0x12   :  { %273 = vmatpush3.msra.mxu1 %v117_v17 }
  0x13   :  { %274 = vmatprep.subr.mxu1 %v320_v1 }
  0x14   :  { %275 = vmatpush3.msra.mxu1 %v116_v18 }
  0x15   :  { %276 = vmatprep.subr.mxu1 %v320_v1 }
  0x16   :  { %277 = vmatpush3.msra.mxu1 %v115_v19 }
  0x17   :  { %278 = vmatprep.subr.mxu1 %v320_v1 }
  0x18   :  { %279 = vmatpush3.msra.mxu1 %v114_v20 }
  0x19   :  { %280 = vmatprep.subr.mxu1 %v320_v1 }
  0x1a   :  { %281 = vmatpush3.msra.mxu1 %v113_v21 }
  0x1b   :  { %282 = vmatprep.subr.mxu1 %v320_v1 }
  0x1c   :  { %283 = vmatpush3.msra.mxu1 %v112_v22 }
  0x1d   :  { %284 = vmatprep.subr.mxu1 %v320_v1 }
  0x1e   :  { %285 = vmatpush3.msra.mxu1 %v111_v23 }
  0x1f   :  { %286 = vmatprep.subr.mxu1 %v320_v1 }
  0x20   :  { %287 = vmatpush3.msra.mxu1 %v110_v24 }
  0x21   :  { %288 = vmatprep.subr.mxu1 %v320_v1 }
  0x22   :  { %289 = vmatpush3.msra.mxu1 %v109_v25 }
  0xd1   :  { %v104_v27 = vpop.f32.mrf.mxu0 }
  0xd2   :  { %v105_v28 = vadd.f32 %v211_v26, %v104_v27 }
  0xd3   :  { %v257_v29 = vpop.f32.mrf.mxu0 }
  0xd4   :  { %296 = vtanh.f32 %v105_v28 }
  0xe1   :  { %v297_v30 = vpop.eup %296 }
  0xe2   :  { %291 = vmatmul.mubr.f32.vlgmr.msra.gmra.mxu1 %v297_v30 }
 0x1a2   :  { %v191_v31 = vpop.f32.mrf.mxu1 }
 0x1a3   :  { %196 = vst.msk [vmem:[#allocation2] sm:$0xff] %vm195_vm2, %v191_v31 }
 0x1a4   :  { %v292_v32 = vpop.f32.mrf.mxu1 }
 0x1a5   :  { %309 = shalt.err (!%p306_p4)
}
 0x1a6   :  { %206 = dma.vmem_to_hbm [thread:$0]  %s204_s14, 128, %s459_s4, [#allocation3]  }
 0x1a7   :  { %318 = dma.done.wait [#allocation3], 128  }
 0x1a8   :  { %319 = vsyncadd [#allocation3], 4294967168 }
 0x1a9   :  { %210 = vsyncpa [#allocation3], 1 }

</bundles_post_ra>
